<compile_context>
chip_gen: v7x
topology: tpu7x:2x2x1
jax: 0.10.0
libtpu: 0.0.40
codegen_flags: <defaults>
</compile_context>

<pallas_src>
import jax
import jax.numpy as jnp
from jax.experimental import pallas as pl
from jax.experimental.pallas import tpu as pltpu


def bottleneck_kernel(x_ref, w1_ref, b1_ref, w2_ref, b2_ref, o_ref):
    # x_ref:  (Cin, TM)  pixels on the lane axis
    # w1_ref: (P, Cin)   conv1 weight with bn1 scale folded in
    # b1_ref: (P, 1)     bn1 bias (beta - mean*scale), f32
    # w2_ref: (P, P)     conv2 weight with bn2 scale folded in
    # b2_ref: (P, 1)     bn2 bias, f32
    # o_ref:  (P, TM)
    x = x_ref[...]
    h = jnp.dot(w1_ref[...], x, preferred_element_type=jnp.float32)      # conv1 (+bn1 scale)
    h = jnp.maximum(h + b1_ref[...], 0.0)                                # bn1 bias + relu
    h = jnp.dot(w2_ref[...], h.astype(w2_ref.dtype),
                preferred_element_type=jnp.float32)                      # conv2 (+bn2 scale)
    h = jnp.maximum(h + b2_ref[...], 0.0)                                # bn2 bias + relu
    o_ref[...] = h.astype(o_ref.dtype)


def _pick_tile(HW, N, Cin, P, in_itemsize, out_itemsize,
               tile_budget_bytes=16 << 20):
    """Pick the lane tile (tm) and the (possibly padded) pixel count."""
    # Double-buffered bytes per lane column for the streamed operands (x, out).
    per_lane = 2 * (Cin * in_itemsize + P * out_itemsize)
    max_tm = max(128, (tile_budget_bytes // per_lane) // 128 * 128)
    if HW <= max_tm:
        tm = HW
        # v7x: guarantee >= 2 parallel grid steps so both TensorCores get work.
        if N == 1 and HW >= 256 and HW % 256 == 0:
            tm = HW // 2
        return tm, HW
    # Prefer the largest 128-multiple <= max_tm that divides HW (no padding).
    t = max_tm
    while t >= 128:
        if HW % t == 0:
            return t, HW
        t -= 128
    # Fallback: pad HW up to a multiple of max_tm (tail pixels sliced off later).
    tm = max_tm
    HW_pad = ((HW + tm - 1) // tm) * tm
    return tm, HW_pad


def bottleneck_forward(x_nchw, w1, gamma1, beta1, rmean1, rvar1,
                       w2, gamma2, beta2, rmean2, rvar2,
                       eps=1e-5, compute_dtype=jnp.bfloat16, out_dtype=None):
    """Fused 1x1-conv/BN/ReLU x2 (inference-mode BN).

    compute_dtype: dtype x and the folded weights are streamed/fed to the MXU
        in (f32 accumulation always). bf16 halves the HBM read on v5e/v6e/v7x.
    out_dtype: dtype written back to HBM; defaults to compute_dtype.
    """
    if out_dtype is None:
        out_dtype = compute_dtype
    N, Cin, H, W = x_nchw.shape
    P = w1.shape[0]
    HW = H * W

    # Fold BN (inference) into per-output-channel scale/bias; fold the scale
    # into the conv weights so the kernel only adds a bias.
    s1 = gamma1 / jnp.sqrt(rvar1 + eps)
    b1 = beta1 - rmean1 * s1
    s2 = gamma2 / jnp.sqrt(rvar2 + eps)
    b2 = beta2 - rmean2 * s2

    w1_f = (w1[:, :, 0, 0] * s1[:, None]).astype(compute_dtype)   # (P, Cin)
    w2_f = (w2[:, :, 0, 0] * s2[:, None]).astype(compute_dtype)   # (P, P)
    b1_col = b1.reshape(P, 1).astype(jnp.float32)
    b2_col = b2.reshape(P, 1).astype(jnp.float32)

    # NCHW -> (N, C, H*W): free reshape; channels on sublanes, pixels on lanes.
    x_cm = x_nchw.reshape(N, Cin, HW).astype(compute_dtype)

    in_it = jnp.dtype(compute_dtype).itemsize
    out_it = jnp.dtype(out_dtype).itemsize
    tm, HW_pad = _pick_tile(HW, N, Cin, P, in_it, out_it)
    if HW_pad != HW:
        x_cm = jnp.pad(x_cm, ((0, 0), (0, 0), (0, HW_pad - HW)))

    grid = (N, HW_pad // tm)

    # Explicit VMEM budget: double-buffered x/out tiles + (double-buffered)
    # constants, with 2x headroom; never below the 32 MiB default scoped limit
    # and never above v7x's 64 MiB physical VMEM.
    tile_bytes = 2 * tm * (Cin * in_it + P * out_it)
    const_bytes = 2 * ((P * Cin + P * P) * in_it + 2 * P * 4)
    vmem_limit = int(min(64 << 20,
                         max(32 << 20, 2 * (tile_bytes + const_bytes) + (2 << 20))))

    cost = pl.CostEstimate(
        flops=2 * N * HW_pad * (Cin * P + P * P),
        transcendentals=0,
        bytes_accessed=(N * HW_pad * Cin) * in_it
                       + (N * HW_pad * P) * out_it
                       + (P * Cin + P * P) * in_it
                       + 2 * P * 4,
    )

    out_cm = pl.pallas_call(
        bottleneck_kernel,
        out_shape=jax.ShapeDtypeStruct((N, P, HW_pad), out_dtype),
        grid_spec=pltpu.PrefetchScalarGridSpec(
            num_scalar_prefetch=0,
            grid=grid,
            in_specs=[
                pl.BlockSpec((None, Cin, tm), lambda n, j: (n, 0, j)),  # x slab
                pl.BlockSpec((P, Cin), lambda n, j: (0, 0)),            # w1 (folded)
                pl.BlockSpec((P, 1), lambda n, j: (0, 0)),              # bias1
                pl.BlockSpec((P, P), lambda n, j: (0, 0)),              # w2 (folded)
                pl.BlockSpec((P, 1), lambda n, j: (0, 0)),              # bias2
            ],
            out_specs=pl.BlockSpec((None, P, tm), lambda n, j: (n, 0, j)),
        ),
        compiler_params=pltpu.CompilerParams(
            dimension_semantics=("parallel", "parallel"),
            vmem_limit_bytes=vmem_limit),
        cost_estimate=cost,
    )(x_cm, w1_f, b1_col, w2_f, b2_col)

    if HW_pad != HW:
        out_cm = out_cm[:, :, :HW]
    # (N, P, H*W) -> NCHW, free reshape.
    return out_cm.reshape(N, P, H, W)


def reference_forward(x_nchw, w1, gamma1, beta1, rmean1, rvar1,
                      w2, gamma2, beta2, rmean2, rvar2, eps=1e-5):
    # Pure-JAX reference (NCHW, 1x1 convs via einsum), inference-mode BN, f32.
    def bn(y, g, b, m, v):
        return (y - m[None, :, None, None]) / jnp.sqrt(v[None, :, None, None] + eps) \
               * g[None, :, None, None] + b[None, :, None, None]
    h = jnp.einsum('nchw,oc->nohw', x_nchw, w1[:, :, 0, 0])
    h = jax.nn.relu(bn(h, gamma1, beta1, rmean1, rvar1))
    h = jnp.einsum('nchw,oc->nohw', h, w2[:, :, 0, 0])
    h = jax.nn.relu(bn(h, gamma2, beta2, rmean2, rvar2))
    return h


if __name__ == "__main__":
    key = jax.random.PRNGKey(0)
    N, Cin, H, W = 2, 4, 16, 16   # inplanes = 4
    P = 8                         # planes = 8

    keys = jax.random.split(key, 8)
    x = jax.random.normal(keys[0], (N, Cin, H, W), dtype=jnp.float32)

    # Deterministic parameter init (shapes from Bottleneck.__init__).
    w1 = jax.random.normal(keys[1], (P, Cin, 1, 1), jnp.float32) * 0.2
    w2 = jax.random.normal(keys[2], (P, P, 1, 1), jnp.float32) * 0.2
    gamma1 = 1.0 + 0.1 * jax.random.normal(keys[3], (P,), jnp.float32)
    beta1 = 0.1 * jax.random.normal(keys[4], (P,), jnp.float32)
    rmean1 = 0.05 * jax.random.normal(keys[5], (P,), jnp.float32)
    rvar1 = jnp.abs(1.0 + 0.1 * jax.random.normal(keys[6], (P,), jnp.float32))
    gamma2 = jnp.ones((P,), jnp.float32)
    beta2 = jnp.zeros((P,), jnp.float32)
    rmean2 = jnp.zeros((P,), jnp.float32)
    rvar2 = jnp.abs(1.0 + 0.1 * jax.random.normal(keys[7], (P,), jnp.float32))

    ref = reference_forward(x, w1, gamma1, beta1, rmean1, rvar1,
                            w2, gamma2, beta2, rmean2, rvar2)

    # 1) Default fast path: bf16 streaming, f32 accumulation (loose tolerance).
    out_bf16 = bottleneck_forward(x, w1, gamma1, beta1, rmean1, rvar1,
                                  w2, gamma2, beta2, rmean2, rvar2)
    out_bf16 = jax.block_until_ready(out_bf16)
    assert out_bf16.shape == (N, P, H, W)
    assert jnp.allclose(out_bf16.astype(jnp.float32), ref, atol=8e-2, rtol=8e-2), \
        "bf16 path mismatch vs reference"

    # 2) Full-precision path: f32 everywhere (tight tolerance).
    out_f32 = bottleneck_forward(x, w1, gamma1, beta1, rmean1, rvar1,
                                 w2, gamma2, beta2, rmean2, rvar2,
                                 compute_dtype=jnp.float32, out_dtype=jnp.float32)
    out_f32 = jax.block_until_ready(out_f32)
    assert out_f32.shape == (N, P, H, W)
    assert jnp.allclose(out_f32, ref, atol=1e-4, rtol=1e-4), \
        "f32 path mismatch vs reference"

    print("KERNEL_OK")
</pallas_src>

<mosaic_0001>
module attributes {stable_mosaic.version = 11 : i64} {
  func.func @bottleneck_kernel(%arg0: i32, %arg1: i32, %arg2: memref<1x4x256xbf16, #tpu.memory_space<vmem>>, %arg3: memref<8x4xbf16, #tpu.memory_space<vmem>>, %arg4: memref<8x1xf32, #tpu.memory_space<vmem>>, %arg5: memref<8x8xbf16, #tpu.memory_space<vmem>>, %arg6: memref<8x1xf32, #tpu.memory_space<vmem>>, %arg7: memref<1x8x256xbf16, #tpu.memory_space<vmem>>) attributes {dimension_semantics = [#tpu.dimension_semantics<parallel>, #tpu.dimension_semantics<parallel>], iteration_bounds = array<i64: 2, 1>, scalar_prefetch = 0 : i64, scratch_operands = 0 : i64, tpu.core_type = #tpu.core_type<tc>, window_params = [{transform_indices = @transform_0, window_bounds = array<i64: 1, 4, 256>}, {pipeline_mode = #tpu.pipeline_mode<synchronous>, transform_indices = @transform_1, window_bounds = array<i64: 8, 4>}, {pipeline_mode = #tpu.pipeline_mode<synchronous>, transform_indices = @transform_2, window_bounds = array<i64: 8, 1>}, {pipeline_mode = #tpu.pipeline_mode<synchronous>, transform_indices = @transform_3, window_bounds = array<i64: 8, 8>}, {pipeline_mode = #tpu.pipeline_mode<synchronous>, transform_indices = @transform_4, window_bounds = array<i64: 8, 1>}, {transform_indices = @transform_5, window_bounds = array<i64: 1, 8, 256>}]} {
    %c0 = arith.constant 0 : index
    %c0_0 = arith.constant 0 : index
    %c0_1 = arith.constant 0 : index
    %0 = vector.load %arg2[%c0, %c0_0, %c0_1] : memref<1x4x256xbf16, #tpu.memory_space<vmem>>, vector<1x4x256xbf16>
    %1 = vector.shape_cast %0 : vector<1x4x256xbf16> to vector<4x256xbf16>
    %c0_2 = arith.constant 0 : index
    %c0_3 = arith.constant 0 : index
    %2 = vector.load %arg3[%c0_2, %c0_3] : memref<8x4xbf16, #tpu.memory_space<vmem>>, vector<8x4xbf16>
    %cst = arith.constant dense<0.000000e+00> : vector<8x256xf32>
    %3 = tpu.matmul %2, %1, %cst {dimension_numbers = #tpu.dot_dimension_numbers<[1], [0], [0], [1], [0, 0, 1, 1], [], []>} : vector<8x4xbf16>, vector<4x256xbf16>, vector<8x256xf32> -> vector<8x256xf32>
    %c0_4 = arith.constant 0 : index
    %c0_5 = arith.constant 0 : index
    %4 = vector.load %arg4[%c0_4, %c0_5] : memref<8x1xf32, #tpu.memory_space<vmem>>, vector<8x1xf32>
    %5 = vector.broadcast %4 : vector<8x1xf32> to vector<8x256xf32>
    %6 = arith.addf %3, %5 : vector<8x256xf32>
    %cst_6 = arith.constant 0.000000e+00 : f32
    %7 = vector.broadcast %cst_6 : f32 to vector<8x256xf32>
    %8 = arith.maximumf %6, %7 : vector<8x256xf32>
    %c0_7 = arith.constant 0 : index
    %c0_8 = arith.constant 0 : index
    %9 = vector.load %arg5[%c0_7, %c0_8] : memref<8x8xbf16, #tpu.memory_space<vmem>>, vector<8x8xbf16>
    %10 = arith.truncf %8 : vector<8x256xf32> to vector<8x256xbf16>
    %cst_9 = arith.constant dense<0.000000e+00> : vector<8x256xf32>
    %11 = tpu.matmul %9, %10, %cst_9 {dimension_numbers = #tpu.dot_dimension_numbers<[1], [0], [0], [1], [0, 0, 1, 1], [], []>} : vector<8x8xbf16>, vector<8x256xbf16>, vector<8x256xf32> -> vector<8x256xf32>
    %c0_10 = arith.constant 0 : index
    %c0_11 = arith.constant 0 : index
    %12 = vector.load %arg6[%c0_10, %c0_11] : memref<8x1xf32, #tpu.memory_space<vmem>>, vector<8x1xf32>
    %13 = vector.broadcast %12 : vector<8x1xf32> to vector<8x256xf32>
    %14 = arith.addf %11, %13 : vector<8x256xf32>
    %cst_12 = arith.constant 0.000000e+00 : f32
    %15 = vector.broadcast %cst_12 : f32 to vector<8x256xf32>
    %16 = arith.maximumf %14, %15 : vector<8x256xf32>
    %17 = arith.truncf %16 : vector<8x256xf32> to vector<8x256xbf16>
    %c0_13 = arith.constant 0 : index
    %c0_14 = arith.constant 0 : index
    %c0_15 = arith.constant 0 : index
    %18 = vector.load %arg7[%c0_13, %c0_14, %c0_15] : memref<1x8x256xbf16, #tpu.memory_space<vmem>>, vector<1x8x256xbf16>
    %19 = vector.shape_cast %18 : vector<1x8x256xbf16> to vector<8x256xbf16>
    %20 = vector.shape_cast %17 : vector<8x256xbf16> to vector<1x8x256xbf16>
    tpu.vector_store %arg7[%c0_13, %c0_14, %c0_15], %20 {strides = array<i32>} : memref<1x8x256xbf16, #tpu.memory_space<vmem>>, vector<1x8x256xbf16>,
    return
  }
  func.func @transform_0(%arg0: i32, %arg1: i32) -> (i32, i32, i32) {
    %c0_i32 = arith.constant 0 : i32
    %c0_i32_0 = arith.constant 0 : i32
    return %arg0, %c0_i32, %arg1 : i32, i32, i32
  }
  func.func @transform_1(%arg0: i32, %arg1: i32) -> (i32, i32) {
    %c0_i32 = arith.constant 0 : i32
    %c0_i32_0 = arith.constant 0 : i32
    %c0_i32_1 = arith.constant 0 : i32
    return %c0_i32, %c0_i32_0 : i32, i32
  }
  func.func @transform_2(%arg0: i32, %arg1: i32) -> (i32, i32) {
    %c0_i32 = arith.constant 0 : i32
    %c0_i32_0 = arith.constant 0 : i32
    %c0_i32_1 = arith.constant 0 : i32
    return %c0_i32, %c0_i32_0 : i32, i32
  }
  func.func @transform_3(%arg0: i32, %arg1: i32) -> (i32, i32) {
    %c0_i32 = arith.constant 0 : i32
    %c0_i32_0 = arith.constant 0 : i32
    %c0_i32_1 = arith.constant 0 : i32
    return %c0_i32, %c0_i32_0 : i32, i32
  }
  func.func @transform_4(%arg0: i32, %arg1: i32) -> (i32, i32) {
    %c0_i32 = arith.constant 0 : i32
    %c0_i32_0 = arith.constant 0 : i32
    %c0_i32_1 = arith.constant 0 : i32
    return %c0_i32, %c0_i32_0 : i32, i32
  }
  func.func @transform_5(%arg0: i32, %arg1: i32) -> (i32, i32, i32) {
    %c0_i32 = arith.constant 0 : i32
    %c0_i32_0 = arith.constant 0 : i32
    return %arg0, %c0_i32, %arg1 : i32, i32, i32
  }
}

</mosaic_0001>

<bundles_post_ra>
// kernel: tpu_custom_call.1
= control target key start
LH: loop header
LB: loop body
LE: loop exit
PB: predicated region body
PF: predicated region fallthrough
CT: control target
= control target key end

     0   :  { %10 = vsyncpa [#allocation3], 0  ;;  %s806_s0 = inlined_call_operand.vmem [shape: bf16[2,4,256], index: 0, kind: input, shape index: {}]   ;;  %s807_s1 = inlined_call_operand.vmem [shape: bf16[8,4], index: 1, kind: input, shape index: {}]   ;;  %s808_s2 = inlined_call_operand.vmem [shape: f32[8,1], index: 2, kind: input, shape index: {}]   ;;  %s809_s3 = inlined_call_operand.vmem [shape: bf16[8,8], index: 3, kind: input, shape index: {}]   ;;  %s810_s4 = inlined_call_operand.vmem [shape: f32[8,1], index: 4, kind: input, shape index: {}]   ;;  %s811_s5 = inlined_call_operand.hbm [shape: bf16[2,8,256], index: 5, kind: output, shape index: {}]  }
   0x1   :  { %12 = vsyncpa [#allocation3 + $0x1], 0  ;;  %s682_s18 = smov 0   ;;  %s684_s19 = smov 0  }
   0x2   :  { %s686_s20 = smov 0   ;;  %s688_s21 = smov 0  }
   0x3   :  { %s690_s22 = smov 0   ;;  %s692_s23 = smov 0  }
   0x4 LB: > { %s491_s24 = sadd.s32 4294967295, %s648_s23   ;;  %s492_s25 = sadd.s32 4294967294, %s648_s23   ;;  %s648_s23 = sphi %s692_s23, %s18_s23   ;;  %s644_s22 = sphi %s690_s22, %s818_s22   ;;  %s640_s21 = sphi %s688_s21, %s817_s21   ;;  %s636_s20 = sphi %s686_s20, %s816_s20   ;;  %s632_s19 = sphi %s684_s19, %s815_s19   ;;  %s628_s18 = sphi %s682_s18, %s814_s18  }
   0x5   : > { %s30_s26 = sadd.s32 1, %s644_s22  ;;  %s151_s27 = sadd.s32 1, %s636_s20 }
   0x6   : > { %p32_p0 = scmp.ge.s32.totalorder %s30_s26, 2  ;;  %p161_p1 = scmp.ne.s32.totalorder %s636_s20, %s632_s19 }
   0x7   : > { %p162_p2 = scmp.eq.s32.totalorder %s491_s24, 1  ;;  %p167_p3 = scmp.ne.s32.totalorder %s632_s19, %s628_s18 }
   0x8   : > { %s820_s26 = smov (%p32_p0, %s30_s26), 0  ;;  %p168_p5 = scmp.eq.s32.totalorder %s492_s25, 1 }
   0x9   : > { %p722_p4 = por %p162_p2, %p161_p1  ;;  %s146_s29 = ssub.s32 %s644_s22, %s820_s26 }
   0xa   : > { %p495_p6 = scmp.ge.s32.totalorder %s648_s23, 1  ;;  %p149_p7 = scmp.eq.s32.totalorder %s146_s29, 0 }
   0xb   : > { %p729_p8 = por %p168_p5, %p167_p3  ;;  %p211_p9 = scmp.lt.s32.totalorder %s648_s23, 3 }
   0xc   : > { %s735_s6 = scalar_select %p149_p7, %s636_s20, %s151_s27  }
   0xd   : > { %p212_p10 = pnand %p495_p6, %p211_p9 }
   0xe   : > { %p244_p11 = scmp.lt.s32.totalorder (!%p212_p10), %s640_s21, 1  ;;  %v650_v0 = vmov (!%p212_p10), 0   ;;  %v257_v1 = vld [vmem:[%s808_s2] sm:$0xff] (!%p212_p10)  ;;  %vm276_vm0 = vcmask (!%p212_p10), 1041408   ;;  %vm272_vm1 = vcmask (!%p212_p10), 31744   ;;  %vm339_vm2 = vcmask (!%p212_p10), 1043456  }
   0xf   : > { %215 = sbr.rel (%p212_p10) target bundleno = 489 (0x1e9), region = 40  ;;  %315 = vmatprep.mubr.bf16.mxu0 (!%p212_p10), %v650_v0  ;;  %569 = vset.pattern.permute.xlu0 (!%p212_p10), %v650_v0  ;;  %v329_v2 = vld [vmem:[%s810_s4] sm:$0xff] (!%p212_p10)  ;;  %vm335_vm3 = vcmask (!%p212_p10), 64512   ;;  %s240_s27 = sand.u32 (!%p212_p10), 1, %s632_s19  }
  0x10   : > { %260 = vperm.xlu0 (!%p212_p10), %569, %v257_v1   ;;  %378 = vmatprep.mubr.bf16.mxu1 (!%p212_p10), %v650_v0  ;;  %v256_v6 = vld [vmem:[%s807_s1] sm:$0xf] (!%p212_p10)  ;;  %s496_s29 = sshll.u32 (!%p212_p10), %s240_s27, 3  ;;  %s512_s7 = sshll.u32 (!%p212_p10), %s640_s21, 7 }
  0x11   : > { %v326_v19 = vld [vmem:[%s809_s3] sm:$0xf] (!%p212_p10)  ;;  %s242_s8 = scalar_lea.vmem (!%p212_p10), [#allocation2], %s496_s29  ;;  %s399_s13 = scalar_lea.sflag (!%p212_p10), [#allocation3], %s240_s27 }
  0x14   : > { %332 = vperm.xlu0 (!%p212_p10), %569, %v329_v2  }
  0x16   : > { %s245_s9 = scalar_select %p244_p11, %s640_s21, 1 }
  0x17   : > { %s651_s21 = smov [#allocation2]  }
  0x18   : > { %s510_s12 = sshll.u32 %s245_s9, 2  ;;  %s415_s9 = sshll.u32 %s242_s8, 4  ;;  %s761_s9 = int_to_ptr.vmem [resolvable:$true] %s415_s9 }
  0x19   : > { %s251_s15 = scalar_lea.vmem %s806_s0, %s510_s12  ;;  %s759_s12 = scalar_lea.hbm %s811_s5, %s512_s7 }
  0x1a   : > { %v499_v3 = vld.sshfl [vmem:[%s251_s15] sm:$0x33 pattern:$0x76325410]  ;;  %s570_s14 = scalar_lea.vmem %s761_s9, 128  ;;  %s574_s15 = sshll.u32 %s651_s21, 4  ;;  %s575_s15 = int_to_ptr.vmem [resolvable:$false] %s574_s15 }
  0x1b   : > { %v271_v4 = vcombine.high %v499_v3, %v499_v3  ;;  %v278_v5 = vsel %vm276_vm0, %v499_v3, 0  ;;  %p571_p12 = scmp.ne.s32.totalorder %s761_s9, %s570_s14  ;;  %s576_s16 = scalar_lea.vmem %s575_s15, 256 }
  0x1c   : > { %p577_p1 = scmp.lt.s32.totalorder %s761_s9, %s575_s15  ;;  %p578_p2 = scmp.lt.s32.totalorder %s576_s16, %s570_s14 }
  0x1d   : > { %500 = vmatprep.subr.msk.bf16.mxu0 %vm276_vm0, %v271_v4  ;;  %p572_p13 = pnand %p571_p12, %p722_p4 }
  0x1e   : > { %284 = vmatpush1.bf16.msra.mxu0 %v278_v5  ;;  %p579_p3 = por %p578_p2, %p577_p1 }
  0x1f   : > { %p573_p0 = pneg %p572_p13 }
  0x21   : > { %501 = vmatmul.mubr.msk.bf16.vlgmr.msra.gmra.mrb[0].mxu0 %vm272_vm1, %v256_v6  ;;  %p580_p5 = pnand %p579_p3, %p573_p0 }
  0x8f   : > { %v261_v7 = vpop.permute.xlu0 %260 }
  0x93   : > { %v333_v20 = vpop.permute.xlu0 %332 }
  0xf4   : > { %v317_v8 = vpop.f32.mrb[0].mxu0 }
  0xf5   : > { %v318_v9 = vadd.f32 %v317_v8, %v261_v7  ;;  %v319_v10 = vpop.f32.mrb[1].mxu0 }
  0xf6   : > { %v320_v11 = vadd.f32 %v319_v10, %v261_v7  ;;  %v321_v12 = vpop.f32.mrb[2].mxu0 }
  0xf7   : > { %v324_v13 = vmax.f32 %v318_v9, 0.0  ;;  %v322_v14 = vpop.f32.mrb[3].mxu0 }
  0xf8   : > { %v325_v15 = vmax.f32 %v320_v11, 0.0 }
  0xf9   : > { %v327_v16 = vpack.c.bf16 %v324_v13, %v324_v13 }
  0xfa   : > { %v328_v17 = vpack.c.bf16 %v325_v15, %v325_v15 }
  0xfb   : > { %v341_v18 = vsel %vm339_vm2, %v327_v16, 0 }
  0xfc   : > { %502 = vmatprep.subr.msk.bf16.mxu1 %vm339_vm2, %v328_v17 }
  0xfd   : > { %347 = vmatpush1.bf16.msra.mxu1 %v341_v18 }
 0x100   : > { %503 = vmatmul.mubr.msk.bf16.vlgmr.msra.gmra.mrb[0].mxu1 %vm335_vm3, %v326_v19 }
 0x1d3   : > { %v380_v21 = vpop.f32.mrb[0].mxu1 }
 0x1d4   : > { %v381_v22 = vadd.f32 %v380_v21, %v333_v20  ;;  %v382_v23 = vpop.f32.mrb[1].mxu1 }
 0x1d5   : > { %v383_v24 = vadd.f32 %v382_v23, %v333_v20  ;;  %v384_v25 = vpop.f32.mrb[2].mxu1 }
 0x1d6   : > { %v387_v26 = vmax.f32 %v381_v22, 0.0  ;;  %v385_v27 = vpop.f32.mrb[3].mxu1 }
 0x1d7   : > { %v388_v28 = vmax.f32 %v383_v24, 0.0 }
 0x1d9   : > { %v511_v29 = vpack.c.bf16 %v388_v28, %v387_v26 }
 0x1db   : > { %397 = vst [vmem:[%s242_s8] sm:$0xff] %v511_v29 }
 0x1dc   : > { %583 = shalt.err (!%p580_p5)
}
 0x1dd   : > { %s584_s17 = scalar_lea.hbm %s759_s12, 128  ;;  %s588_s27 = scalar_lea.hbm %s811_s5, 256 }
 0x1de   : > { %p585_p6 = scmp.ne.s32.totalorder %s759_s12, %s584_s17  ;;  %p589_p10 = scmp.lt.u32.totalorder %s759_s12, %s811_s5 }
 0x1df   : > { %p590_p11 = scmp.lt.u32.totalorder %s588_s27, %s584_s17  ;;  %p592_p13 = scmp.lt.u32.totalorder %s584_s17, %s759_s12 }
 0x1e0   : > { %p586_p7 = pnand %p585_p6, %p722_p4 }
 0x1e1   : > { %p591_p12 = por %p590_p11, %p589_p10 }
 0x1e2   : > { %p587_p9 = pneg %p586_p7 }
 0x1e3   : > { %p593_p0 = por %p592_p13, %p591_p12 }
 0x1e5   : > { %p594_p1 = pnand %p593_p0, %p587_p9 }
 0x1e7   : > { %597 = shalt.err (!%p594_p1)
}
 0x1e8   : > { %513 = dma.vmem_to_hbm [thread:$0]  (%p722_p4), %s761_s9, 128, %s759_s12, %s399_s13  }
 0x1e9 PF: > { %p519_p2 = scmp.ge.s32.totalorder %s648_s23, 2  ;;  %s427_s8 = sand.u32 1, %s628_s18  }
 0x1ea   : > { %s428_s10 = scalar_lea.sflag [#allocation3], %s427_s8 }
 0x1eb   : > { %p516_p3 = pnand %p519_p2, %p729_p8 }
 0x1ed   : > { %623 = dma.done.wait (!%p516_p3), %s428_s10, 128  }
 0x1ee   : > { %625 = vsyncadd (!%p516_p3), %s428_s10, 4294967168  ;;  %s18_s23 = sadd.s32 1, %s648_s23   ;;  %s814_s18 = smov %s632_s19 }
 0x1ef   : > { %p15_p5 = scmp.ge.s32.totalorder %s18_s23, 4   ;;  %s815_s19 = smov %s636_s20 }
 0x1f0   : > { %s816_s20 = smov %s735_s6  ;;  %s817_s21 = smov %s644_s22 }
 0x1f1   : > { %s818_s22 = smov %s820_s26  ;;  %17 = sbr.rel (!%p15_p5) target bundleno = 4 (0x4), region = 75 }
 0x1f8   :  { %433 = vsyncpa [#allocation3], 1 }
 0x1f9   :  { %435 = vsyncpa [#allocation3 + $0x1], 1 }

</bundles_post_ra>
